<compile_context>
chip_gen: v7x
topology: tpu7x:2x2x1
jax: 0.10.0
libtpu: 0.0.40
codegen_flags: <defaults>
</compile_context>

<pallas_src>
import functools

import jax
import jax.numpy as jnp
from jax.experimental import pallas as pl
from jax.experimental.pallas import tpu as pltpu

_LANE = 128  # vreg lane width


def _mlp_kernel(*refs, num_hidden: int):
    """Fused MLP on one [*, TILE_N] column tile (N on the lane axis).

    refs = (xT_ref,                        # [in_size, TILE_N]
            wT_0, bT_0, ..., wT_L, bT_L,   # wT: [out_f, in_f], bT: [out_f, 1]
            outT_ref)                      # [out_size, TILE_N]
    Hidden layers: h = relu(W @ h + b)   (dropout = identity, eval mode)
    Final layer:   out = W @ h + b
    """
    x_ref = refs[0]
    out_ref = refs[-1]
    param_refs = refs[1:-1]

    h = x_ref[...]
    n_layers = len(param_refs) // 2
    for layer in range(n_layers):
        w = param_refs[2 * layer][...]
        b = param_refs[2 * layer + 1][...].astype(jnp.float32)  # [out_f, 1]
        # MXU-native operand dtypes, f32 accumulation.
        h = jnp.dot(w, h.astype(w.dtype),
                    preferred_element_type=jnp.float32) + b
        if layer < num_hidden:   # hidden layers get ReLU (+ dropout=identity)
            h = jnp.maximum(h, 0.0)
    out_ref[...] = h.astype(out_ref.dtype)


def init_rout_mlp_params(key, in_size, hid_sizes, out_size, dtype=jnp.float32):
    """Deterministic Kaiming-uniform-ish init matching nn.Linear shapes.

    Weights stored as [in_features, out_features] (transposed vs. PyTorch),
    biases as [1, out_features]; the wrapper re-lays them out for the kernel.
    """
    if isinstance(hid_sizes, int):
        hid_sizes = [hid_sizes]
    params = []
    fan_in = in_size
    dims = list(hid_sizes) + [out_size]
    for d_out in dims:
        key, kw, kb = jax.random.split(key, 3)
        bound = 1.0 / jnp.sqrt(jnp.asarray(fan_in, jnp.float32))
        w = jax.random.uniform(kw, (fan_in, d_out), dtype, -bound, bound)
        b = jax.random.uniform(kb, (1, d_out), dtype, -bound, bound)
        params.append((w, b))
        fan_in = d_out
    return params


def rout_mlp_forward(x, params, tile_n: int = 512):
    """Run the fused MLP Pallas kernel.  x: [N, inSize]  ->  [N, outSize]."""
    n, in_size = x.shape
    num_hidden = len(params) - 1
    out_size = params[-1][0].shape[1]

    # ---- layout plumbing in the wrapper: put N on the lane axis ----------
    xt = x.T                                     # [in_size, N]
    flat_params = []
    for (w, b) in params:
        flat_params.append(w.T)                  # [out_f, in_f]
        flat_params.append(b.T)                  # [out_f, 1]

    # Tile / pad N so the lane dim is a multiple of 128 and the row grid can
    # be pipelined.  tile_n default (512) is sized well under the v7x scoped
    # VMEM limit even for much larger feature widths.
    n_pad128 = pl.cdiv(n, _LANE) * _LANE
    tile_n = min(tile_n, n_pad128)
    n_pad = pl.cdiv(n, tile_n) * tile_n
    if n_pad != n:
        xt = jnp.pad(xt, ((0, 0), (0, n_pad - n)))
    grid = (n_pad // tile_n,)

    # x / out tiles march along the grid; weights & biases stay VMEM-resident.
    in_specs = [pl.BlockSpec((in_size, tile_n), lambda i: (0, i))]
    for p in flat_params:
        in_specs.append(pl.BlockSpec(p.shape, lambda i: (0, 0)))

    flops = 2 * n_pad * sum(w.shape[0] * w.shape[1] for (w, _) in params)
    bytes_accessed = 4 * (n_pad * (in_size + out_size)
                          + sum(w.size + b.size for (w, b) in params))

    kernel = functools.partial(_mlp_kernel, num_hidden=num_hidden)

    out_t = pl.pallas_call(
        kernel,
        out_shape=jax.ShapeDtypeStruct((out_size, n_pad), x.dtype),
        grid=grid,
        in_specs=in_specs,
        out_specs=pl.BlockSpec((out_size, tile_n), lambda i: (0, i)),
        compiler_params=pltpu.CompilerParams(
            dimension_semantics=("parallel",)),      # shards rows on v7x 2-TC
        cost_estimate=pl.CostEstimate(flops=flops, transcendentals=0,
                                      bytes_accessed=bytes_accessed),
    )(xt, *flat_params)

    return out_t[:, :n].T                         # back to [N, out_size]


def rout_mlp_reference(x, params):
    """Pure-JAX reference for correctness checking."""
    h = x.astype(jnp.float32)
    num_hidden = len(params) - 1
    for i, (w, b) in enumerate(params):
        h = h @ w.astype(jnp.float32) + b.astype(jnp.float32)
        if i < num_hidden:
            h = jnp.maximum(h, 0.0)
    return h.astype(x.dtype)


if __name__ == "__main__":
    key = jax.random.PRNGKey(0)
    kx, kp = jax.random.split(key)

    # Small shapes consistent with forward(x: [N, F]):
    N, in_size, hid_size, out_size = 8, 16, 32, 2
    x = jax.random.normal(kx, (N, in_size), jnp.float32)

    params = init_rout_mlp_params(kp, in_size, hid_size, out_size)

    out = rout_mlp_forward(x, params)
    out = jax.block_until_ready(out)

    ref = rout_mlp_reference(x, params)
    assert out.shape == (N, out_size), out.shape
    assert jnp.allclose(out, ref, atol=1e-5, rtol=1e-5), "mismatch vs reference"

    # Also exercise a multi-tile N (>1 grid step, padded) to validate tiling.
    N2 = 300
    x2 = jax.random.normal(kx, (N2, in_size), jnp.float32)
    out2 = jax.block_until_ready(rout_mlp_forward(x2, params, tile_n=128))
    ref2 = rout_mlp_reference(x2, params)
    assert out2.shape == (N2, out_size), out2.shape
    assert jnp.allclose(out2, ref2, atol=1e-5, rtol=1e-5), "tiled mismatch"

    print("KERNEL_OK")
</pallas_src>

<mosaic_0001>
module attributes {stable_mosaic.version = 11 : i64} {
  func.func @_mlp_kernel(%arg0: i32, %arg1: memref<16x128xf32, #tpu.memory_space<vmem>>, %arg2: memref<32x16xf32, #tpu.memory_space<vmem>>, %arg3: memref<32x1xf32, #tpu.memory_space<vmem>>, %arg4: memref<2x32xf32, #tpu.memory_space<vmem>>, %arg5: memref<2x1xf32, #tpu.memory_space<vmem>>, %arg6: memref<2x128xf32, #tpu.memory_space<vmem>>) attributes {dimension_semantics = [#tpu.dimension_semantics<parallel>], iteration_bounds = array<i64: 1>, scalar_prefetch = 0 : i64, scratch_operands = 0 : i64, tpu.core_type = #tpu.core_type<tc>, window_params = [{transform_indices = @transform_0, window_bounds = array<i64: 16, 128>}, {pipeline_mode = #tpu.pipeline_mode<synchronous>, transform_indices = @transform_1, window_bounds = array<i64: 32, 16>}, {pipeline_mode = #tpu.pipeline_mode<synchronous>, transform_indices = @transform_2, window_bounds = array<i64: 32, 1>}, {pipeline_mode = #tpu.pipeline_mode<synchronous>, transform_indices = @transform_3, window_bounds = array<i64: 2, 32>}, {pipeline_mode = #tpu.pipeline_mode<synchronous>, transform_indices = @transform_4, window_bounds = array<i64: 2, 1>}, {transform_indices = @transform_5, window_bounds = array<i64: 2, 128>}]} {
    %c0 = arith.constant 0 : index
    %c0_0 = arith.constant 0 : index
    %0 = vector.load %arg1[%c0, %c0_0] : memref<16x128xf32, #tpu.memory_space<vmem>>, vector<16x128xf32>
    %c0_1 = arith.constant 0 : index
    %c0_2 = arith.constant 0 : index
    %1 = vector.load %arg2[%c0_1, %c0_2] : memref<32x16xf32, #tpu.memory_space<vmem>>, vector<32x16xf32>
    %c0_3 = arith.constant 0 : index
    %c0_4 = arith.constant 0 : index
    %2 = vector.load %arg3[%c0_3, %c0_4] : memref<32x1xf32, #tpu.memory_space<vmem>>, vector<32x1xf32>
    %cst = arith.constant dense<0.000000e+00> : vector<32x128xf32>
    %3 = tpu.matmul %1, %0, %cst {dimension_numbers = #tpu.dot_dimension_numbers<[1], [0], [0], [1], [0, 0, 1, 1], [], []>} : vector<32x16xf32>, vector<16x128xf32>, vector<32x128xf32> -> vector<32x128xf32>
    %4 = vector.broadcast %2 : vector<32x1xf32> to vector<32x128xf32>
    %5 = arith.addf %3, %4 : vector<32x128xf32>
    %cst_5 = arith.constant 0.000000e+00 : f32
    %6 = vector.broadcast %cst_5 : f32 to vector<32x128xf32>
    %7 = arith.maximumf %5, %6 : vector<32x128xf32>
    %c0_6 = arith.constant 0 : index
    %c0_7 = arith.constant 0 : index
    %8 = vector.load %arg4[%c0_6, %c0_7] : memref<2x32xf32, #tpu.memory_space<vmem>>, vector<2x32xf32>
    %c0_8 = arith.constant 0 : index
    %c0_9 = arith.constant 0 : index
    %9 = vector.load %arg5[%c0_8, %c0_9] : memref<2x1xf32, #tpu.memory_space<vmem>>, vector<2x1xf32>
    %cst_10 = arith.constant dense<0.000000e+00> : vector<2x128xf32>
    %10 = tpu.matmul %8, %7, %cst_10 {dimension_numbers = #tpu.dot_dimension_numbers<[1], [0], [0], [1], [0, 0, 1, 1], [], []>} : vector<2x32xf32>, vector<32x128xf32>, vector<2x128xf32> -> vector<2x128xf32>
    %11 = vector.broadcast %9 : vector<2x1xf32> to vector<2x128xf32>
    %12 = arith.addf %10, %11 : vector<2x128xf32>
    %c0_11 = arith.constant 0 : index
    %c0_12 = arith.constant 0 : index
    %13 = vector.load %arg6[%c0_11, %c0_12] : memref<2x128xf32, #tpu.memory_space<vmem>>, vector<2x128xf32>
    tpu.vector_store %arg6[%c0_11, %c0_12], %12 {strides = array<i32>} : memref<2x128xf32, #tpu.memory_space<vmem>>, vector<2x128xf32>,
    return
  }
  func.func @transform_0(%arg0: i32) -> (i32, i32) {
    %c0_i32 = arith.constant 0 : i32
    %c0_i32_0 = arith.constant 0 : i32
    return %c0_i32, %arg0 : i32, i32
  }
  func.func @transform_1(%arg0: i32) -> (i32, i32) {
    %c0_i32 = arith.constant 0 : i32
    %c0_i32_0 = arith.constant 0 : i32
    %c0_i32_1 = arith.constant 0 : i32
    return %c0_i32, %c0_i32_0 : i32, i32
  }
  func.func @transform_2(%arg0: i32) -> (i32, i32) {
    %c0_i32 = arith.constant 0 : i32
    %c0_i32_0 = arith.constant 0 : i32
    %c0_i32_1 = arith.constant 0 : i32
    return %c0_i32, %c0_i32_0 : i32, i32
  }
  func.func @transform_3(%arg0: i32) -> (i32, i32) {
    %c0_i32 = arith.constant 0 : i32
    %c0_i32_0 = arith.constant 0 : i32
    %c0_i32_1 = arith.constant 0 : i32
    return %c0_i32, %c0_i32_0 : i32, i32
  }
  func.func @transform_4(%arg0: i32) -> (i32, i32) {
    %c0_i32 = arith.constant 0 : i32
    %c0_i32_0 = arith.constant 0 : i32
    %c0_i32_1 = arith.constant 0 : i32
    return %c0_i32, %c0_i32_0 : i32, i32
  }
  func.func @transform_5(%arg0: i32) -> (i32, i32) {
    %c0_i32 = arith.constant 0 : i32
    %c0_i32_0 = arith.constant 0 : i32
    return %c0_i32, %arg0 : i32, i32
  }
}

</mosaic_0001>

<bundles_post_ra>
// kernel: tpu_custom_call.1
= control target key start
LH: loop header
LB: loop body
LE: loop exit
PB: predicated region body
PF: predicated region fallthrough
CT: control target
= control target key end

     0   :  { %vm51_vm0 = vcmask 130048   ;;  %v327_v4 = vmov 0   ;;  %s414_s0 = inlined_call_operand.vmem [shape: f32[16,128], index: 0, kind: input, shape index: {}]   ;;  %s415_s1 = inlined_call_operand.vmem [shape: f32[32,16], index: 1, kind: input, shape index: {}]   ;;  %s416_s2 = inlined_call_operand.vmem [shape: f32[32,1], index: 2, kind: input, shape index: {}]   ;;  %s417_s3 = inlined_call_operand.vmem [shape: f32[2,32], index: 3, kind: input, shape index: {}]   ;;  %s418_s4 = inlined_call_operand.vmem [shape: f32[2,1], index: 4, kind: input, shape index: {}]   ;;  %s419_s5 = inlined_call_operand.hbm [shape: f32[2,128], index: 5, kind: output, shape index: {}]  }
   0x1   :  { %v21_v0 = vld [vmem:[%s414_s0] sm:$0xff]  ;;  %v22_v1 = vld [vmem:[%s414_s0 + $0x8] sm:$0xff]  ;;  %301 = vset.pattern.permute.xlu0 %v327_v4  ;;  %302 = vset.pattern.permute.xlu1 %v327_v4  ;;  %v29_v6 = vld [vmem:[%s416_s2 + $0x10] sm:$0xff] }
   0x2   :  { %v23_v2 = vld [vmem:[%s415_s1] sm:$0xff]  ;;  %v286_v3 = vpack.c.bf16 %v22_v1, %v21_v0 }
   0x3   :  { %269 = vmatprep.mubr.msk.f32.mxu0 %vm51_vm0, %v23_v2  ;;  %v27_v5 = vld [vmem:[%s416_s2] sm:$0xff] }
   0x4   :  { %287 = vmatprep.subr.bf16.mxu0 %v286_v3  ;;  %33 = vperm.xlu0 %301, %v27_v5  }
   0x5   :  { %10 = vsyncpa [#allocation3], 0  ;;  %289 = vmatpush3.bf16.msra.mxu0 %v286_v3  ;;  %v24_v7 = vld [vmem:[%s415_s1 + $0x8] sm:$0xff]  ;;  %43 = vperm.xlu1 %302, %v29_v6   ;;  %v25_v9 = vld [vmem:[%s415_s1 + $0x10] sm:$0xff]  ;;  %v328_v13 = vmov 0.0|0.0   ;;  %vm329_vm1 = vmmov 0  }
   0x6   :  { %v28_v8 = vld [vmem:[%s416_s2 + $0x8] sm:$0xff]  ;;  %v30_v10 = vld [vmem:[%s416_s2 + $0x18] sm:$0xff]  ;;  %v154_v12 = vld [vmem:[%s418_s4] sm:$0x3]  ;;  %290 = vmatprep.subr.bf16.mxu1 %v328_v13  ;;  %v330_v14 = vmov 0.0   ;;  %vm160_vm2 = vcmask 261120  }
   0x7   :  { %v26_v11 = vld [vmem:[%s415_s1 + $0x18] sm:$0xff]  ;;  %283 = vmatprep.mubr.msk.f32.mxu1 %vm329_vm1, %v330_v14  ;;  %v153_v33 = vld [vmem:[%s417_s3] sm:$0x3]  ;;  %s331_s4 = smov [#allocation2]  }
   0x8   :  { %270 = vmatmul.mubr.msk.f32.vlgmr.msra.gmra.mrb[0].mxu0 %vm51_vm0, %v24_v7  ;;  %38 = vperm.xlu0 %301, %v28_v8   ;;  %s241_s14 = sshll.u32 %s331_s4, 4  ;;  %s242_s14 = int_to_ptr.vmem [resolvable:$true] %s241_s14 }
   0x9   :  { %272 = vmatprep.mubr.msk.f32.mxu0 %vm51_vm0, %v25_v9  ;;  %48 = vperm.xlu1 %302, %v30_v10   ;;  %s303_s15 = scalar_lea.vmem %s242_s14, 32  ;;  %p308_p1 = scmp.lt.s32.totalorder %s242_s14, %s242_s14 }
   0xa   :  { %p304_p0 = scmp.ne.s32.totalorder %s242_s14, %s303_s15  ;;  %p309_p2 = scmp.lt.s32.totalorder %s303_s15, %s303_s15 }
   0xc   :  { %273 = vmatmul.mubr.msk.f32.gmra.mrb[2].mxu0 %vm51_vm0, %v26_v11  ;;  %157 = vperm.xlu0 %301, %v154_v12   ;;  %p310_p3 = por %p309_p2, %p308_p1 }
   0xe   :  { %p311_p4 = pnand %p310_p3, %p304_p0 }
  0x83   :  { %v34_v15 = vpop.permute.xlu0 %33 }
  0x84   :  { %v44_v16 = vpop.permute.xlu1 %43 }
  0x87   :  { %v39_v17 = vpop.permute.xlu0 %38 }
  0x88   :  { %v49_v23 = vpop.permute.xlu1 %48 }
  0x8b   :  { %v158_v34 = vpop.permute.xlu0 %157 }
  0xdb   :  { %v271_v18 = vpop.f32.mrb[0].mxu0 }
  0xdc   :  { %v136_v19 = vadd.f32 %v271_v18, %v39_v17  ;;  %v130_v20 = vpop.f32.mrb[1].mxu0 }
  0xdd   :  { %v131_v21 = vadd.f32 %v130_v20, %v34_v15 }
  0xde   :  { %v150_v22 = vmax.f32 %v136_v19, 0.0 }
  0xdf   :  { %v149_v24 = vmax.f32 %v131_v21, 0.0  ;;  %v274_v25 = vpop.f32.mrb[2].mxu0 }
  0xe0   :  { %v146_v26 = vadd.f32 %v274_v25, %v49_v23  ;;  %v140_v27 = vpop.f32.mrb[3].mxu0 }
  0xe1   :  { %v141_v28 = vadd.f32 %v140_v27, %v44_v16  ;;  %v291_v29 = vpack.c.bf16 %v150_v22, %v149_v24 }
  0xe2   :  { %v152_v30 = vmax.f32 %v146_v26, 0.0 }
  0xe3   :  { %v151_v31 = vmax.f32 %v141_v28, 0.0  ;;  %292 = vmatpush3.bf16.msra.mxu1 %v291_v29 }
  0xe4   :  { %293 = vmatprep.subr.bf16.mxu1 %v328_v13 }
  0xe5   :  { %v294_v32 = vpack.c.bf16 %v152_v30, %v151_v31 }
  0xe7   :  { %295 = vmatpush3.bf16.msra.mxu1 %v294_v32 }
  0xea   :  { %284 = vmatmul.mubr.msk.f32.vlgmr.msra.gmra.mrb[0].mxu1 %vm160_vm2, %v153_v33 }
 0x1bd   :  { %v230_v35 = vpop.f32.mrb[0].mxu1 }
 0x1be   :  { %v231_v36 = vadd.f32 %v230_v35, %v158_v34  ;;  %v285_v37 = vpop.f32.mrb[1].mxu1 }
 0x1c0   :  { %234 = vst [vmem:[#allocation2] sm:$0x3] %v231_v36 }
 0x1c1   :  { %314 = shalt.err (!%p311_p4)
}
 0x1c2   :  { %s315_s3 = scalar_lea.hbm %s419_s5, 32 }
 0x1c3   :  { %p316_p5 = scmp.ne.s32.totalorder %s419_s5, %s315_s3  ;;  %p319_p6 = scmp.lt.u32.totalorder %s315_s3, %s419_s5 }
 0x1c5   :  { %p321_p7 = pnand %p319_p6, %p316_p5 }
 0x1c7   :  { %324 = shalt.err (!%p321_p7)
}
 0x1c8   :  { %244 = dma.vmem_to_hbm [thread:$0]  %s242_s14, 32, %s419_s5, [#allocation3]  }
 0x1c9   :  { %325 = dma.done.wait [#allocation3], 32  }
 0x1ca   :  { %326 = vsyncadd [#allocation3], 4294967264 }
 0x1cb   :  { %248 = vsyncpa [#allocation3], 1 }

</bundles_post_ra>
